<compile_context>
chip_gen: v5e
topology: v5e:2x2
jax: 0.10.0
libtpu: 0.0.40
codegen_flags: <defaults>
</compile_context>

<pallas_src>
import jax
import jax.numpy as jnp
from jax.experimental import pallas as pl
from jax.experimental.pallas import tpu as pltpu

LANE = 128      # TPU lane width
SUBLANE = 8     # f32 sublane count


def _mlp_classifier_kernel(hs_ref, wp_ref, bp_ref, w1_ref, b1_ref, w2_ref, b2_ref,
                           out_ref, pool_acc):
    """Fused BERT pooler + 2-layer MLP head; pooler reduction tiled over grid axis 0.

    Per grid step k (pipelined / double-buffered):
      hs_ref : (Bp, S, tk)  f32   chunk k of encoder hidden states (CLS row used)
      wp_ref : (tk, H)      bf16  chunk k of the pooler dense weight
    Constant across k (DMA'd once):
      bp_ref : (1, H)  f32     w1_ref : (H, M)  bf16    b1_ref : (1, M)  f32
      w2_ref : (M, Lp) bf16    b2_ref : (1, Lp) f32
      out_ref: (Bp, Lp) f32    pool_acc: (Bp, H) f32 scratch accumulator
    """
    k = pl.program_id(0)

    @pl.when(k == 0)
    def _init():
        pool_acc[...] = jnp.zeros_like(pool_acc)

    # CLS row of this hidden-state chunk; bf16 operands feed the MXU, f32 accumulation.
    cls = hs_ref[:, 0, :].astype(jnp.bfloat16)                       # (Bp, tk)
    pool_acc[...] += jnp.dot(cls, wp_ref[...],
                             preferred_element_type=jnp.float32)     # (Bp, H)

    @pl.when(k == pl.num_programs(0) - 1)
    def _finalize():
        # Elementwise math stays f32 (v5e VPU/EUP have no bf16 support).
        pooled = jnp.tanh(pool_acc[...] + bp_ref[...])               # BERT pooler
        h = jnp.dot(pooled.astype(jnp.bfloat16), w1_ref[...],
                    preferred_element_type=jnp.float32) + b1_ref[...]
        h = jnp.maximum(h, 0.0)                                      # ReLU (Dropout = id)
        logits = jnp.dot(h.astype(jnp.bfloat16), w2_ref[...],
                         preferred_element_type=jnp.float32) + b2_ref[...]
        out_ref[...] = logits.astype(out_ref.dtype)                  # lane-dense store


def bert_mlp_classifier_forward(last_hidden_state, params, num_labels, labels=None):
    """JAX wrapper: run the fused Pallas head on the encoder output; optional CE loss."""
    B, S, H = last_hidden_state.shape
    M = params["w1"].shape[1]
    Lp = params["w2"].shape[1]            # label dim already zero-padded to 128 lanes

    # Pad batch to a sublane multiple so (Bp, *) tiles are well formed.
    Bp = ((B + SUBLANE - 1) // SUBLANE) * SUBLANE
    if Bp != B:
        last_hidden_state = jnp.pad(last_hidden_state,
                                    ((0, Bp - B), (0, 0), (0, 0)))

    tk = LANE if H % LANE == 0 else H     # reduction tile over hidden size
    assert H % tk == 0
    grid = (H // tk,)

    grid_spec = pltpu.PrefetchScalarGridSpec(
        num_scalar_prefetch=0,
        grid=grid,
        in_specs=[
            # Encoder output: BlockSpec DMAs only H-chunk k; CLS row picked in-kernel.
            pl.BlockSpec((Bp, S, tk), lambda k: (0, 0, k)),
            pl.BlockSpec((tk, H), lambda k: (k, 0)),     # wp chunk (double-buffered)
            pl.BlockSpec((1, H),  lambda k: (0, 0)),     # bp
            pl.BlockSpec((H, M),  lambda k: (0, 0)),     # w1 (fetched once)
            pl.BlockSpec((1, M),  lambda k: (0, 0)),     # b1
            pl.BlockSpec((M, Lp), lambda k: (0, 0)),     # w2 (lane-padded)
            pl.BlockSpec((1, Lp), lambda k: (0, 0)),     # b2 (lane-padded)
        ],
        out_specs=pl.BlockSpec((Bp, Lp), lambda k: (0, 0)),
        scratch_shapes=[pltpu.VMEM((Bp, H), jnp.float32)],   # pooler accumulator
    )

    logits_padded = pl.pallas_call(
        _mlp_classifier_kernel,
        out_shape=jax.ShapeDtypeStruct((Bp, Lp), jnp.float32),
        grid_spec=grid_spec,
        compiler_params=pltpu.CompilerParams(
            dimension_semantics=("arbitrary",)),             # reduction axis
    )(last_hidden_state,
      params["wp"], params["bp"],
      params["w1"], params["b1"],
      params["w2"], params["b2"])

    logits = logits_padded[:B, :num_labels]

    loss = None
    if labels is not None:
        # CrossEntropyLoss (mean) -- plain-JAX glue, not the hot path.
        logp = jax.nn.log_softmax(logits, axis=-1)
        loss = -jnp.mean(jnp.take_along_axis(logp, labels[:, None], axis=-1))
    return logits, loss


def init_params(key, hidden_size, mlp_hidden_dim, num_labels):
    """Deterministic synthetic parameters (shapes match the PyTorch module).

    Weight matrices are stored in bf16 (bandwidth); biases in f32. The output
    Linear is zero-padded along the label dim to a full 128-lane width.
    """
    ks = jax.random.split(key, 6)
    s = 0.02
    lp = max(LANE, ((num_labels + LANE - 1) // LANE) * LANE)

    wp = s * jax.random.normal(ks[0], (hidden_size, hidden_size), jnp.float32)
    w1 = s * jax.random.normal(ks[1], (hidden_size, mlp_hidden_dim), jnp.float32)
    b1 = s * jax.random.normal(ks[2], (1, mlp_hidden_dim), jnp.float32)
    w2 = s * jax.random.normal(ks[3], (mlp_hidden_dim, num_labels), jnp.float32)
    b2 = s * jax.random.normal(ks[4], (1, num_labels), jnp.float32)

    w2p = jnp.zeros((mlp_hidden_dim, lp), jnp.float32).at[:, :num_labels].set(w2)
    b2p = jnp.zeros((1, lp), jnp.float32).at[:, :num_labels].set(b2)

    return {
        # BERT pooler dense
        "wp": wp.astype(jnp.bfloat16),
        "bp": jnp.zeros((1, hidden_size), jnp.float32),
        # mlp_head[0]: Linear(hidden_size, mlp_hidden_dim)
        "w1": w1.astype(jnp.bfloat16),
        "b1": b1,
        # mlp_head[3]: Linear(mlp_hidden_dim, num_labels), lane-padded to 128
        "w2": w2p.astype(jnp.bfloat16),
        "b2": b2p,
    }


if __name__ == "__main__":
    # Small shapes consistent with the module's forward:
    #   batch=8, seq=16, hidden=256 (stand-in for 768), mlp_hidden=512 (module default),
    #   num_labels=2 (lane-padded to 128 inside the kernel).
    B, S, H, M, L = 8, 16, 256, 512, 2

    key = jax.random.PRNGKey(0)
    k_hid, k_par, k_lab = jax.random.split(key, 3)

    # Synthetic encoder output (stand-in for base_model(...).last_hidden_state)
    last_hidden_state = jax.random.normal(k_hid, (B, S, H), jnp.float32)
    params = init_params(k_par, hidden_size=H, mlp_hidden_dim=M, num_labels=L)
    labels = jax.random.randint(k_lab, (B,), 0, L)

    logits, loss = bert_mlp_classifier_forward(last_hidden_state, params, L, labels=labels)
    jax.block_until_ready(logits)
    jax.block_until_ready(loss)

    # Reference check against plain JAX (f32 math on the same bf16-stored weights;
    # tolerance loosened for bf16 MXU operands -- expected, not a bug).
    cls = last_hidden_state[:, 0, :]
    wp_f = params["wp"].astype(jnp.float32)
    w1_f = params["w1"].astype(jnp.float32)
    w2_f = params["w2"].astype(jnp.float32)[:, :L]
    pooled_ref = jnp.tanh(cls @ wp_f + params["bp"])
    h_ref = jnp.maximum(pooled_ref @ w1_f + params["b1"], 0.0)
    logits_ref = h_ref @ w2_f + params["b2"][:, :L]
    assert jnp.allclose(logits, logits_ref, atol=2e-2, rtol=2e-2), (
        float(jnp.max(jnp.abs(logits - logits_ref))))
    assert logits.shape == (B, L)

    print("KERNEL_OK")
</pallas_src>

<mosaic_0001>
module attributes {stable_mosaic.version = 11 : i64} {
  func.func @_mlp_classifier_kernel(%arg0: i32, %arg1: memref<8x16x128xf32, #tpu.memory_space<vmem>>, %arg2: memref<128x256xbf16, #tpu.memory_space<vmem>>, %arg3: memref<1x256xf32, #tpu.memory_space<vmem>>, %arg4: memref<256x512xbf16, #tpu.memory_space<vmem>>, %arg5: memref<1x512xf32, #tpu.memory_space<vmem>>, %arg6: memref<512x128xbf16, #tpu.memory_space<vmem>>, %arg7: memref<1x128xf32, #tpu.memory_space<vmem>>, %arg8: memref<8x128xf32, #tpu.memory_space<vmem>>, %arg9: memref<8x256xf32, #tpu.memory_space<vmem>>) attributes {dimension_semantics = [#tpu.dimension_semantics<arbitrary>], iteration_bounds = array<i64: 2>, scalar_prefetch = 0 : i64, scratch_operands = 1 : i64, tpu.core_type = #tpu.core_type<tc>, window_params = [{transform_indices = @transform_0, window_bounds = array<i64: 8, 16, 128>}, {transform_indices = @transform_1, window_bounds = array<i64: 128, 256>}, {pipeline_mode = #tpu.pipeline_mode<synchronous>, transform_indices = @transform_2, window_bounds = array<i64: 1, 256>}, {pipeline_mode = #tpu.pipeline_mode<synchronous>, transform_indices = @transform_3, window_bounds = array<i64: 256, 512>}, {pipeline_mode = #tpu.pipeline_mode<synchronous>, transform_indices = @transform_4, window_bounds = array<i64: 1, 512>}, {pipeline_mode = #tpu.pipeline_mode<synchronous>, transform_indices = @transform_5, window_bounds = array<i64: 512, 128>}, {pipeline_mode = #tpu.pipeline_mode<synchronous>, transform_indices = @transform_6, window_bounds = array<i64: 1, 128>}, {pipeline_mode = #tpu.pipeline_mode<synchronous>, transform_indices = @transform_7, window_bounds = array<i64: 8, 128>}]} {
    %c0_i32 = arith.constant 0 : i32
    %0 = arith.cmpi eq, %arg0, %c0_i32 : i32
    %1 = arith.extui %0 : i1 to i32
    %c0_i32_0 = arith.constant 0 : i32
    %2 = arith.cmpi ne, %1, %c0_i32_0 : i32
    scf.if %2 {
      %cst_10 = arith.constant 0.000000e+00 : f32
      %14 = vector.broadcast %cst_10 : f32 to vector<8x256xf32>
      %c0_11 = arith.constant 0 : index
      %c0_12 = arith.constant 0 : index
      %15 = vector.load %arg9[%c0_11, %c0_12] : memref<8x256xf32, #tpu.memory_space<vmem>>, vector<8x256xf32>
      tpu.vector_store %arg9[%c0_11, %c0_12], %14 {strides = array<i32>} : memref<8x256xf32, #tpu.memory_space<vmem>>, vector<8x256xf32>,
    } else {
    }
    %c0 = arith.constant 0 : index
    %c0_1 = arith.constant 0 : index
    %c0_2 = arith.constant 0 : index
    %3 = vector.load %arg1[%c0, %c0_1, %c0_2] : memref<8x16x128xf32, #tpu.memory_space<vmem>>, vector<8x1x128xf32>
    %4 = vector.shape_cast %3 : vector<8x1x128xf32> to vector<8x128xf32>
    %5 = arith.truncf %4 : vector<8x128xf32> to vector<8x128xbf16>
    %c0_3 = arith.constant 0 : index
    %c0_4 = arith.constant 0 : index
    %6 = vector.load %arg9[%c0_3, %c0_4] : memref<8x256xf32, #tpu.memory_space<vmem>>, vector<8x256xf32>
    %c0_5 = arith.constant 0 : index
    %c0_6 = arith.constant 0 : index
    %7 = vector.load %arg2[%c0_5, %c0_6] : memref<128x256xbf16, #tpu.memory_space<vmem>>, vector<128x256xbf16>
    %cst = arith.constant dense<0.000000e+00> : vector<8x256xf32>
    %8 = tpu.matmul %5, %7, %cst {dimension_numbers = #tpu.dot_dimension_numbers<[1], [0], [0], [1], [0, 0, 1, 1], [], []>} : vector<8x128xbf16>, vector<128x256xbf16>, vector<8x256xf32> -> vector<8x256xf32>
    %9 = arith.addf %6, %8 : vector<8x256xf32>
    %c0_7 = arith.constant 0 : index
    %c0_8 = arith.constant 0 : index
    %10 = vector.load %arg9[%c0_7, %c0_8] : memref<8x256xf32, #tpu.memory_space<vmem>>, vector<8x256xf32>
    tpu.vector_store %arg9[%c0_7, %c0_8], %9 {strides = array<i32>} : memref<8x256xf32, #tpu.memory_space<vmem>>, vector<8x256xf32>,
    %c1_i32 = arith.constant 1 : i32
    %11 = arith.cmpi eq, %arg0, %c1_i32 : i32
    %12 = arith.extui %11 : i1 to i32
    %c0_i32_9 = arith.constant 0 : i32
    %13 = arith.cmpi ne, %12, %c0_i32_9 : i32
    scf.if %13 {
      %c0_10 = arith.constant 0 : index
      %c0_11 = arith.constant 0 : index
      %14 = vector.load %arg9[%c0_10, %c0_11] : memref<8x256xf32, #tpu.memory_space<vmem>>, vector<8x256xf32>
      %c0_12 = arith.constant 0 : index
      %c0_13 = arith.constant 0 : index
      %15 = vector.load %arg3[%c0_12, %c0_13] : memref<1x256xf32, #tpu.memory_space<vmem>>, vector<1x256xf32>
      %16 = vector.broadcast %15 : vector<1x256xf32> to vector<8x256xf32>
      %17 = arith.addf %14, %16 : vector<8x256xf32>
      %18 = math.tanh %17 : vector<8x256xf32>
      %19 = arith.truncf %18 : vector<8x256xf32> to vector<8x256xbf16>
      %c0_14 = arith.constant 0 : index
      %c0_15 = arith.constant 0 : index
      %20 = vector.load %arg4[%c0_14, %c0_15] : memref<256x512xbf16, #tpu.memory_space<vmem>>, vector<256x512xbf16>
      %cst_16 = arith.constant dense<0.000000e+00> : vector<8x512xf32>
      %21 = tpu.matmul %19, %20, %cst_16 {dimension_numbers = #tpu.dot_dimension_numbers<[1], [0], [0], [1], [0, 0, 1, 1], [], []>} : vector<8x256xbf16>, vector<256x512xbf16>, vector<8x512xf32> -> vector<8x512xf32>
      %c0_17 = arith.constant 0 : index
      %c0_18 = arith.constant 0 : index
      %22 = vector.load %arg5[%c0_17, %c0_18] : memref<1x512xf32, #tpu.memory_space<vmem>>, vector<1x512xf32>
      %23 = vector.broadcast %22 : vector<1x512xf32> to vector<8x512xf32>
      %24 = arith.addf %21, %23 : vector<8x512xf32>
      %cst_19 = arith.constant 0.000000e+00 : f32
      %25 = vector.broadcast %cst_19 : f32 to vector<8x512xf32>
      %26 = arith.maximumf %24, %25 : vector<8x512xf32>
      %27 = arith.truncf %26 : vector<8x512xf32> to vector<8x512xbf16>
      %c0_20 = arith.constant 0 : index
      %c0_21 = arith.constant 0 : index
      %28 = vector.load %arg6[%c0_20, %c0_21] : memref<512x128xbf16, #tpu.memory_space<vmem>>, vector<512x128xbf16>
      %cst_22 = arith.constant dense<0.000000e+00> : vector<8x128xf32>
      %29 = tpu.matmul %27, %28, %cst_22 {dimension_numbers = #tpu.dot_dimension_numbers<[1], [0], [0], [1], [0, 0, 1, 1], [], []>} : vector<8x512xbf16>, vector<512x128xbf16>, vector<8x128xf32> -> vector<8x128xf32>
      %c0_23 = arith.constant 0 : index
      %c0_24 = arith.constant 0 : index
      %30 = vector.load %arg7[%c0_23, %c0_24] : memref<1x128xf32, #tpu.memory_space<vmem>>, vector<1x128xf32>
      %31 = vector.broadcast %30 : vector<1x128xf32> to vector<8x128xf32>
      %32 = arith.addf %29, %31 : vector<8x128xf32>
      %c0_25 = arith.constant 0 : index
      %c0_26 = arith.constant 0 : index
      %33 = vector.load %arg8[%c0_25, %c0_26] : memref<8x128xf32, #tpu.memory_space<vmem>>, vector<8x128xf32>
      tpu.vector_store %arg8[%c0_25, %c0_26], %32 {strides = array<i32>} : memref<8x128xf32, #tpu.memory_space<vmem>>, vector<8x128xf32>,
    } else {
    }
    return
  }
  func.func @transform_0(%arg0: i32) -> (i32, i32, i32) {
    %c0_i32 = arith.constant 0 : i32
    %c0_i32_0 = arith.constant 0 : i32
    %c0_i32_1 = arith.constant 0 : i32
    return %c0_i32, %c0_i32_0, %arg0 : i32, i32, i32
  }
  func.func @transform_1(%arg0: i32) -> (i32, i32) {
    %c0_i32 = arith.constant 0 : i32
    %c0_i32_0 = arith.constant 0 : i32
    return %arg0, %c0_i32 : i32, i32
  }
  func.func @transform_2(%arg0: i32) -> (i32, i32) {
    %c0_i32 = arith.constant 0 : i32
    %c0_i32_0 = arith.constant 0 : i32
    %c0_i32_1 = arith.constant 0 : i32
    return %c0_i32, %c0_i32_0 : i32, i32
  }
  func.func @transform_3(%arg0: i32) -> (i32, i32) {
    %c0_i32 = arith.constant 0 : i32
    %c0_i32_0 = arith.constant 0 : i32
    %c0_i32_1 = arith.constant 0 : i32
    return %c0_i32, %c0_i32_0 : i32, i32
  }
  func.func @transform_4(%arg0: i32) -> (i32, i32) {
    %c0_i32 = arith.constant 0 : i32
    %c0_i32_0 = arith.constant 0 : i32
    %c0_i32_1 = arith.constant 0 : i32
    return %c0_i32, %c0_i32_0 : i32, i32
  }
  func.func @transform_5(%arg0: i32) -> (i32, i32) {
    %c0_i32 = arith.constant 0 : i32
    %c0_i32_0 = arith.constant 0 : i32
    %c0_i32_1 = arith.constant 0 : i32
    return %c0_i32, %c0_i32_0 : i32, i32
  }
  func.func @transform_6(%arg0: i32) -> (i32, i32) {
    %c0_i32 = arith.constant 0 : i32
    %c0_i32_0 = arith.constant 0 : i32
    %c0_i32_1 = arith.constant 0 : i32
    return %c0_i32, %c0_i32_0 : i32, i32
  }
  func.func @transform_7(%arg0: i32) -> (i32, i32) {
    %c0_i32 = arith.constant 0 : i32
    %c0_i32_0 = arith.constant 0 : i32
    %c0_i32_1 = arith.constant 0 : i32
    return %c0_i32, %c0_i32_0 : i32, i32
  }
}

</mosaic_0001>

<bundles_post_ra>
// kernel: tpu_custom_call.1
= control target key start
LH: loop header
LB: loop body
LE: loop exit
PB: predicated region body
PF: predicated region fallthrough
CT: control target
= control target key end

     0   :  { %s2771_s0 = inlined_call_operand.hbm [shape: f32[8,16,256], index: 0, kind: input, shape index: {}]   ;;  %s2772_s1 = inlined_call_operand.hbm [shape: bf16[256,256], index: 1, kind: input, shape index: {}]   ;;  %s2773_s2 = inlined_call_operand.hbm [shape: f32[1,256], index: 2, kind: input, shape index: {}]   ;;  %s2774_s3 = inlined_call_operand.hbm [shape: bf16[256,512], index: 3, kind: input, shape index: {}]   ;;  %s2775_s4 = inlined_call_operand.hbm [shape: f32[1,512], index: 4, kind: input, shape index: {}]   ;;  %s2776_s5 = inlined_call_operand.hbm [shape: bf16[512,128], index: 5, kind: input, shape index: {}]   ;;  %s2777_s6 = inlined_call_operand.vmem [shape: f32[1,128], index: 6, kind: input, shape index: {}]   ;;  %s2778_s7 = inlined_call_operand.hbm [shape: f32[8,128], index: 7, kind: output, shape index: {}]  }
   0x1   :  { %2780 = sst [smem:[#allocation21_spill]] %s2771_s0 }
   0x2   :  { %2781 = sst [smem:[#allocation22_spill]] %s2773_s2 }
   0x3   :  { %2782 = sst [smem:[#allocation23_spill]] %s2774_s3 }
   0x4   :  { %2783 = sst [smem:[#allocation24_spill]] %s2775_s4 }
   0x5   :  { %12 = vsyncpa [#allocation4], 0 }
   0x6   :  { %14 = vsyncpa [#allocation4 + $0x1], 0 }
   0x7   :  { %15 = vsyncpa [#allocation7], 0 }
   0x8   :  { %17 = vsyncpa [#allocation7 + $0x1], 0 }
   0x9   :  { %18 = vsyncpa [#allocation10], 0 }
   0xa   :  { %19 = vsyncpa [#allocation13], 0 }
   0xb   :  { %20 = vsyncpa [#allocation5], 0  ;;  %s2546_s24 = smov 0   ;;  %s2548_s25 = smov 0  }
   0xc   :  { %s2550_s26 = smov 0   ;;  %s2552_s27 = smov 0  }
   0xd LB: > { %s2565_s28 = sadd.s32 4294967295, %s2492_s27   ;;  %p46_p0 = scmp.ne.s32.totalorder %s2484_s25, %s2480_s24  ;;  %s2492_s27 = sphi %s2552_s27, %s2796_s27   ;;  %s2488_s26 = sphi %s2550_s26, %s2795_s26   ;;  %s2484_s25 = sphi %s2548_s25, %s2794_s25   ;;  %s2480_s24 = sphi %s2546_s24, %s2793_s24  }
   0xe   : > { %p47_p1 = scmp.eq.s32.totalorder %s2565_s28, 0  ;;  %p1539_p2 = scmp.ge.s32.totalorder %s2492_s27, 1 }
   0xf   : > { %p209_p3 = scmp.lt.s32.totalorder %s2492_s27, 3  ;;  %p1540_p4 = scmp.ne.s32.totalorder %s2565_s28, 0 }
  0x10   : > { %p2574_p5 = por %p47_p1, %p46_p0  ;;  %s2785_s2 = sld [smem:[#allocation22_spill]] }
  0x11   : > { %p2581_p6 = pnand %p1539_p2, %p209_p3  ;;  %s2494_s11 = smov [#allocation8]  }
  0x12   : > { %s223_s12 = sshll.u32 %s2494_s11, 4  ;;  %s2787_s3 = sld [smem:[#allocation23_spill]]  ;;  %s224_s12 = int_to_ptr.vmem [resolvable:$true] %s223_s12 }
  0x13   : > { %p2150_p7 = pneg %p2581_p6  ;;  %s2495_s17 = smov [#allocation9]  }
  0x14   : > { %s234_s18 = sshll.u32 %s2495_s17, 4  ;;  %s2779_s19 = smov 256   ;;  %s235_s18 = int_to_ptr.vmem [resolvable:$true] %s234_s18 }
  0x15   : > { %p2592_p8 = pnand %p2150_p7, %p47_p1  ;;  %s2497_s20 = smov 16  }
  0x16   : > { %s221_s9 = sshll.u32 %s2785_s2, 4  ;;  %s2789_s4 = sld [smem:[#allocation24_spill]]  ;;  %s222_s9 = int_to_ptr.hbm [resolvable:$true] %s221_s9 }
  0x17   : > { %2153 = dma.hbm_to_vmem [thread:$0]  (!%p2592_p8), %s222_s9, 32, %s224_s12, [#allocation7]  }
  0x18   : > { %s232_s15 = sshll.u32 %s2787_s3, 4  ;;  %s2498_s24 = smov [#allocation11]   ;;  %s233_s15 = int_to_ptr.hbm [resolvable:$true] %s232_s15 }
  0x19   : > { %2156 = dma.hbm_to_vmem [thread:$0]  (!%p2592_p8), %s233_s15, 8192, %s235_s18, [#allocation10], %s2779_s19, %s2779_s19, %s2497_s20  }
  0x1a   : > { %s249_s30 = sshll.u32 %s2498_s24, 4  ;;  %s258_s11 = sshll.u32 %s2776_s5, 4  ;;  %s250_s30 = int_to_ptr.vmem [resolvable:$true] %s249_s30  ;;  %s259_s11 = int_to_ptr.hbm [resolvable:$true] %s258_s11 }
  0x1b   : > { %s2499_s12 = smov [#allocation12]   ;;  %s2500_s14 = smov 64  }
  0x1c   : > { %s247_s23 = sshll.u32 %s2789_s4, 4  ;;  %s260_s13 = sshll.u32 %s2499_s12, 4  ;;  %s248_s23 = int_to_ptr.hbm [resolvable:$true] %s247_s23  ;;  %s261_s13 = int_to_ptr.vmem [resolvable:$true] %s260_s13 }
  0x1d   : > { %2159 = dma.hbm_to_vmem [thread:$0]  (!%p2592_p8), %s248_s23, 64, %s250_s30, [#allocation10]  }
  0x1e   : > { %s2501_s15 = smov 4   ;;  %s2613_s17 = sadd.s32 1, %s2492_s27  }
  0x1f   : > { %2162 = dma.hbm_to_vmem [thread:$0]  (!%p2592_p8), %s259_s11, 4096, %s261_s13, [#allocation13], %s2500_s14, %s2500_s14, %s2501_s15  }
  0x20   : > { %s30_s18 = ssub.s32 %s2492_s27, %s2613_s17  ;;  %s33_s20 = sadd.s32 1, %s2488_s26 }
  0x21   : > { %p31_p9 = scmp.eq.s32.totalorder %s30_s18, 0  ;;  %p40_p10 = scmp.ne.s32.totalorder %s2488_s26, %s2484_s25 }
  0x22   : > { %p41_p11 = scmp.eq.s32.totalorder %s2492_s27, 0  ;;  %p2174_p13 = scmp.lt.s32.totalorder %s2492_s27, 2 }
  0x23   : > { %s2622_s21 = scalar_select %p31_p9, %s2488_s26, %s33_s20  }
  0x24   : > { %p42_p12 = por %p41_p11, %p40_p10  ;;  %s277_s22 = sand.u32 1, %s2488_s26  }
  0x25   : > { %s1546_s23 = sshll.u32 %s2492_s27, 3  ;;  %s2627_s24 = sshll.u32 %s277_s22, 7 }
  0x26   : > { %s2790_s0 = sld [smem:[#allocation21_spill]]  ;;  %s281_s11 = scalar_lea.vmem [#allocation3], %s2627_s24 }
  0x27   : > { %s288_s12 = sshll.u32 %s281_s11, 4  ;;  %p2633_p0 = pnand %p2174_p13, %p42_p12  ;;  %s289_s12 = int_to_ptr.vmem [resolvable:$true] %s288_s12 }
  0x28   : > { %s298_s14 = sand.u32 1, %s2492_s27   ;;  %s278_s15 = scalar_lea.sflag [#allocation4], %s277_s22 }
  0x29   : > { %p2354_p3 = pneg %p2633_p0 }
  0x2c   : > { %s285_s8 = scalar_lea.hbm %s2790_s0, %s1546_s23  ;;  %s2357_s16 = scalar_lea.hbm %s2790_s0, 256 }
  0x2d   : > { %s286_s9 = sshll.u32 %s285_s8, 4  ;;  %s287_s9 = int_to_ptr.hbm [resolvable:$true] %s286_s9 }
  0x2e   : > { %s2350_s18 = sshra.s32 %s287_s9, 4  ;;  %s2351_s18 = int_to_ptr.hbm [resolvable:$true] %s2350_s18 }
  0x2f   : > { %s2352_s20 = scalar_lea.hbm %s2351_s18, 128  ;;  %p2358_p9 = scmp.lt.s32.totalorder %s2351_s18, %s2790_s0 }
  0x30   : > { %p2353_p2 = scmp.ne.s32.totalorder %s2351_s18, %s2352_s20  ;;  %p2359_p10 = scmp.lt.s32.totalorder %s2357_s16, %s2352_s20 }
  0x32   : > { %p2355_p7 = pnand %p2354_p3, %p2353_p2  ;;  %p2360_p11 = por %p2359_p10, %p2358_p9 }
  0x34   : > { %p2356_p8 = pneg %p2355_p7 }
  0x36   : > { %p2361_p12 = pnand %p2360_p11, %p2356_p8 }
  0x38   : > { %2364 = shalt.err (!%p2361_p12)
}
  0x39   : > { %s2502_s22 = smov 128   ;;  %s2503_s19 = smov 8  }
  0x3a   : > { %s2792_s2 = smov 256   ;;  %s2013_s3 = sshll.u32 %s2492_s27, 7 }
  0x3b   : > { %2166 = dma.hbm_to_vmem [thread:$0]  (!%p2633_p0), %s287_s9, 2048, %s289_s12, %s278_s15, %s2792_s2, %s2502_s22, %s2503_s19  }
  0x3c   : > { %s308_s4 = scalar_lea.hbm %s2772_s1, %s2013_s3  ;;  %s302_s8 = scalar_lea.vmem [#allocation6], %s2627_s24 }
  0x3d   : > { %s311_s18 = sshll.u32 %s302_s8, 4  ;;  %s309_s20 = sshll.u32 %s308_s4, 4  ;;  %s312_s18 = int_to_ptr.vmem [resolvable:$true] %s311_s18  ;;  %s310_s20 = int_to_ptr.hbm [resolvable:$true] %s309_s20 }
  0x3e   : > { %s299_s16 = scalar_lea.sflag [#allocation7], %s298_s14  ;;  %s2380_s11 = sshra.s32 %s310_s20, 4  ;;  %s2381_s11 = int_to_ptr.hbm [resolvable:$true] %s2380_s11 }
  0x3f   : > { %s2382_s0 = scalar_lea.hbm %s2381_s11, 128  ;;  %s2387_s9 = scalar_lea.hbm %s2772_s1, 256 }
  0x40   : > { %p2383_p13 = scmp.ne.s32.totalorder %s2381_s11, %s2382_s0  ;;  %p2388_p8 = scmp.lt.s32.totalorder %s2381_s11, %s2772_s1 }
  0x41   : > { %p2389_p9 = scmp.lt.s32.totalorder %s2387_s9, %s2382_s0 }
  0x42   : > { %p2385_p2 = pnand %p2383_p13, %p2354_p3 }
  0x43   : > { %p2390_p10 = por %p2389_p9, %p2388_p8 }
  0x44   : > { %p2386_p7 = pneg %p2385_p2 }
  0x46   : > { %p2391_p11 = pnand %p2390_p10, %p2386_p7 }
  0x48   : > { %2394 = shalt.err (!%p2391_p11)
}
  0x49   : > { %2169 = dma.hbm_to_vmem [thread:$0]  (!%p2633_p0), %s310_s20, 2048, %s312_s18, %s299_s16, %s2502_s22, %s2502_s22, %s2503_s19  }
  0x4a   : > { %323 = sbr.rel (%p2581_p6) target bundleno = 619 (0x26b), region = 48  ;;  %s325_s4 = sand.u32 (!%p2581_p6), 1, %s2484_s25  }
  0x4b   : > { %s1552_s24 = sshll.u32 (!%p2581_p6), %s325_s4, 7  ;;  %s326_s14 = scalar_lea.sflag (!%p2581_p6), [#allocation4], %s325_s4 }
  0x4c   : > { %s2671_s15 = scalar_lea.vmem (!%p2581_p6), [#allocation3], %s1552_s24 }
  0x4f   : > { %2455 = dma.done.wait (%p2574_p5), %s326_s14, 2048  }
  0x50   : > { %2457 = vsyncadd (%p2574_p5), %s326_s14, 4294965248  ;;  %s335_s0 = sand.u32 1, %s2565_s28   ;;  %s2678_s19 = scalar_lea.vmem [#allocation6], %s1552_s24 }
  0x51   : > { %s336_s13 = scalar_lea.sflag [#allocation7], %s335_s0 }
  0x52   : > { %2459 = dma.done.wait (%p2574_p5), %s336_s13, 2048  }
  0x53   : > { %2461 = vsyncadd (%p2574_p5), %s336_s13, 4294965248 }
  0x54   : > { %2463 = dma.done.wait (%p47_p1), [#allocation7], 32  }
  0x55   : > { %2465 = vsyncadd (%p47_p1), [#allocation7], 4294967264 }
  0x56   : > { %2467 = dma.done.wait (%p47_p1), [#allocation10], 8256  }
  0x57   : > { %2469 = vsyncadd (%p47_p1), [#allocation10], 4294959040 }
  0x58   : > { %2471 = dma.done.wait (%p47_p1), [#allocation13], 4096  }
  0x59   : > { %2473 = vsyncadd (%p47_p1), [#allocation13], 4294963200  ;;  %395 = sbr.rel (%p1540_p4) target bundleno = 97 (0x61), region = 76 }
  0x5e   : > { %v2504_v0 = vmov 0.0  }
  0x5f   : > { %396 = vst [vmem:[#allocation2] sm:$0xff] %v2504_v0 }
  0x60   : > { %397 = vst [vmem:[#allocation2 + $0x8] sm:$0xff] %v2504_v0 }
  0x61 PF: > { %v1617_v1 = vld [vmem:[%s2678_s19 + $0x70] sm:$0xf]  ;;  %v2029_v2 = vld [vmem:[%s2678_s19 + $0x74] sm:$0xf0]  ;;  %v2028_v3 = vld [vmem:[%s2678_s19 + $0x74] sm:$0xf] }
  0x62   : > { %v1618_v4 = vor.u32 %v2029_v2, %v1617_v1  ;;  %v1619_v5 = vld [vmem:[%s2678_s19 + $0x78] sm:$0xf0]  ;;  %v1609_v6 = vld [vmem:[%s2678_s19 + $0x60] sm:$0xf]  ;;  %v2027_v7 = vld [vmem:[%s2678_s19 + $0x64] sm:$0xf0] }
  0x63   : > { %v1622_v8 = vor.u32 %v2028_v3, %v1619_v5  ;;  %v2026_v9 = vld [vmem:[%s2678_s19 + $0x64] sm:$0xf]  ;;  %v1611_v10 = vld [vmem:[%s2678_s19 + $0x68] sm:$0xf0]  ;;  %v1610_v11 = vor.u32 %v2027_v7, %v1609_v6  ;;  %v1601_v13 = vld [vmem:[%s2678_s19 + $0x50] sm:$0xf] }
  0x64   : > { %551 = vmatpush.bf16.msra.mxu0 %v1618_v4  ;;  %v1614_v12 = vor.u32 %v2026_v9, %v1611_v10  ;;  %v2025_v14 = vld [vmem:[%s2678_s19 + $0x54] sm:$0xf0]  ;;  %v2024_v15 = vld [vmem:[%s2678_s19 + $0x54] sm:$0xf]  ;;  %v1603_v16 = vld [vmem:[%s2678_s19 + $0x58] sm:$0xf0] }
  0x65   : > { %564 = vmatpush.bf16.msra.mxu1 %v1622_v8  ;;  %v1602_v17 = vor.u32 %v2025_v14, %v1601_v13  ;;  %v1593_v18 = vld [vmem:[%s2678_s19 + $0x40] sm:$0xf]  ;;  %v1606_v19 = vor.u32 %v2024_v15, %v1603_v16  ;;  %v2023_v20 = vld [vmem:[%s2678_s19 + $0x44] sm:$0xf0]  ;;  %v2022_v21 = vld [vmem:[%s2678_s19 + $0x44] sm:$0xf] }
  0x66   : > { %v1595_v22 = vld [vmem:[%s2678_s19 + $0x48] sm:$0xf0]  ;;  %v1585_v23 = vld [vmem:[%s2678_s19 + $0x30] sm:$0xf]  ;;  %v2021_v24 = vld [vmem:[%s2678_s19 + $0x34] sm:$0xf0]  ;;  %v1594_v28 = vor.u32 %v2023_v20, %v1593_v18 }
  0x67   : > { %v2020_v25 = vld [vmem:[%s2678_s19 + $0x34] sm:$0xf]  ;;  %v1587_v26 = vld [vmem:[%s2678_s19 + $0x38] sm:$0xf0]  ;;  %v398_v27 = vld [vmem:[%s2671_s15] sm:$0x1]  ;;  %v1598_v29 = vor.u32 %v2022_v21, %v1595_v22  ;;  %v1586_v34 = vor.u32 %v2021_v24, %v1585_v23 }
  0x68   : > { %552 = vmatpush.bf16.msra.mxu0 %v1610_v11  ;;  %v399_v30 = vld [vmem:[%s2671_s15 + $0x10] sm:$0x1]  ;;  %v400_v31 = vld [vmem:[%s2671_s15 + $0x20] sm:$0x1]  ;;  %v406_v33 = vpack.c.bf16 %v398_v27, %v398_v27  ;;  %v1590_v41 = vor.u32 %v2020_v25, %v1587_v26  ;;  %v2019_v51 = vld [vmem:[%s2678_s19 + $0x24] sm:$0xf0] }
  0x69   : > { %565 = vmatpush.bf16.msra.mxu1 %v1614_v12  ;;  %v401_v32 = vld [vmem:[%s2671_s15 + $0x30] sm:$0x1]  ;;  %v402_v35 = vld [vmem:[%s2671_s15 + $0x40] sm:$0x1]  ;;  %v407_v38 = vpack.c.bf16 %v399_v30, %v399_v30  ;;  %v408_v39 = vpack.c.bf16 %v400_v31, %v400_v31  ;;  %vm449_vm0 = vcmask 1041409   ;;  %vm452_vm1 = vcmask 1042434  }
  0x6a   : > { %v403_v36 = vld [vmem:[%s2671_s15 + $0x50] sm:$0x1]  ;;  %v404_v37 = vld [vmem:[%s2671_s15 + $0x60] sm:$0x1]  ;;  %v409_v40 = vpack.c.bf16 %v401_v32, %v401_v32  ;;  %v410_v43 = vpack.c.bf16 %v402_v35, %v402_v35  ;;  %v440_v46 = vunpack.c.l.b16 %v406_v33  ;;  %v2018_v55 = vld [vmem:[%s2678_s19 + $0x24] sm:$0xf] }
  0x6b   : > { %v405_v42 = vld [vmem:[%s2671_s15 + $0x70] sm:$0x1]  ;;  %v411_v44 = vpack.c.bf16 %v403_v36, %v403_v36  ;;  %v412_v45 = vpack.c.bf16 %v404_v37, %v404_v37  ;;  %v441_v47 = vunpack.c.l.b16 %v407_v38  ;;  %v442_v48 = vunpack.c.l.b16 %v408_v39  ;;  %v1577_v50 = vld [vmem:[%s2678_s19 + $0x20] sm:$0xf]  ;;  %v1579_v59 = vld [vmem:[%s2678_s19 + $0x28] sm:$0xf0] }
  0x6c   : > { %553 = vmatpush.bf16.msra.mxu0 %v1602_v17  ;;  %v443_v49 = vunpack.c.l.b16 %v409_v40  ;;  %v413_v52 = vpack.c.bf16 %v405_v42, %v405_v42  ;;  %v444_v53 = vunpack.c.l.b16 %v410_v43  ;;  %vm455_vm2 = vcmask 1043459   ;;  %v1569_v4 = vld [vmem:[%s2678_s19 + $0x10] sm:$0xf]  ;;  %v2017_v5 = vld [vmem:[%s2678_s19 + $0x14] sm:$0xf0]  ;;  %p1623_p1 = scmp.ne.s32.totalorder %s2565_s28, 1 }
  0x6d   : > { %566 = vmatpush.bf16.msra.mxu1 %v1606_v19  ;;  %v445_v54 = vunpack.c.l.b16 %v411_v44  ;;  %v446_v56 = vunpack.c.l.b16 %v412_v45  ;;  %v448_v57 = vrot.slane %v441_v47, 7  ;;  %v451_v58 = vrot.slane %v442_v48, 6  ;;  %v2016_v8 = vld [vmem:[%s2678_s19 + $0x14] sm:$0xf]  ;;  %v1571_v9 = vld [vmem:[%s2678_s19 + $0x18] sm:$0xf0] }
  0x6e   : > { %v454_v60 = vrot.slane %v443_v49, 5  ;;  %v457_v61 = vrot.slane %v444_v53, 4  ;;  %vm458_vm3 = vcmask 1044484   ;;  %v1578_v0 = vor.u32 %v2019_v51, %v1577_v50  ;;  %v1561_v15 = vld [vmem:[%s2678_s19] sm:$0xf]  ;;  %v414_v24 = vld [vmem:[#allocation2] sm:$0xff] }
  0x6f   : > { %v450_v62 = vsel %vm449_vm0, %v448_v57, %v440_v46  ;;  %v460_v63 = vrot.slane %v445_v54, 3  ;;  %v447_v1 = vunpack.c.l.b16 %v413_v52  ;;  %vm461_vm4 = vcmask 1045509   ;;  %v2015_v16 = vld [vmem:[%s2678_s19 + $0x4] sm:$0xf0]  ;;  %v2014_v18 = vld [vmem:[%s2678_s19 + $0x4] sm:$0xf] }
  0x70   : > { %554 = vmatpush.bf16.msra.mxu0 %v1594_v28  ;;  %v453_v2 = vsel %vm452_vm1, %v451_v58, %v450_v62  ;;  %v1582_v3 = vor.u32 %v2018_v55, %v1579_v59  ;;  %v463_v7 = vrot.slane %v446_v56, 2  ;;  %vm464_vm5 = vcmask 1046534   ;;  %v1563_v19 = vld [vmem:[%s2678_s19 + $0x8] sm:$0xf0]  ;;  %v415_v25 = vld [vmem:[#allocation2 + $0x8] sm:$0xff] }
  0x71   : > { %567 = vmatpush.bf16.msra.mxu1 %v1598_v29  ;;  %v456_v6 = vsel %vm455_vm2, %v454_v60, %v453_v2  ;;  %v1570_v12 = vor.u32 %v2017_v5, %v1569_v4  ;;  %v466_v13 = vrot.slane %v447_v1, 1  ;;  %v1574_v14 = vor.u32 %v2016_v8, %v1571_v9 }
  0x72   : > { %v459_v10 = vsel %vm458_vm3, %v457_v61, %v456_v6  ;;  %vm467_vm6 = vcmask 1047559   ;;  %v1562_v20 = vor.u32 %v2015_v16, %v1561_v15  ;;  %v1566_v22 = vor.u32 %v2014_v18, %v1563_v19 }
  0x73   : > { %v462_v11 = vsel %vm461_vm4, %v460_v63, %v459_v10 }
  0x74   : > { %555 = vmatpush.bf16.msra.mxu0 %v1586_v34  ;;  %v465_v17 = vsel %vm464_vm5, %v463_v7, %v462_v11 }
  0x75   : > { %568 = vmatpush.bf16.msra.mxu1 %v1590_v41  ;;  %v468_v21 = vsel %vm467_vm6, %v466_v13, %v465_v17 }
  0x76   : > { %v469_v23 = vpack.c.b16 %v468_v21, %v468_v21 }
  0x78   : > { %556 = vmatpush.bf16.msra.mxu0 %v1578_v0 }
  0x79   : > { %569 = vmatpush.bf16.msra.mxu1 %v1582_v3 }
  0x7c   : > { %557 = vmatpush.bf16.msra.mxu0 %v1570_v12 }
  0x7d   : > { %570 = vmatpush.bf16.msra.mxu1 %v1574_v14 }
  0x80   : > { %558 = vmatpush.bf16.msra.mxu0 %v1562_v20 }
  0x81   : > { %571 = vmatpush.bf16.msra.mxu1 %v1566_v22 }
  0x83   : > { %559 = vmatmul.bf16.vlgmr.msra.gmra.mxu0 %v469_v23 }
  0x84   : > { %572 = vmatmul.bf16.vlgmr.msra.gmra.mxu1 %v469_v23 }
 0x100   : > { %v560_v26 = vpop.f32.mrf.mxu0 }
 0x101   : > { %v577_v27 = vadd.f32 %v560_v26, %v414_v24  ;;  %v573_v28 = vpop.f32.mrf.mxu1 }
 0x102   : > { %v578_v29 = vadd.f32 %v573_v28, %v415_v25 }
 0x103   : > { %579 = vst [vmem:[#allocation2] sm:$0xff] %v577_v27 }
 0x104   : > { %580 = vst [vmem:[#allocation2 + $0x8] sm:$0xff] %v578_v29 }
 0x105   : > { %584 = sbr.rel (%p1623_p1) target bundleno = 614 (0x266), region = 80 }
 0x108   : > { %v562_v30 = vpop.f32.mrf.mxu0 }
 0x109   : > { %v575_v31 = vpop.f32.mrf.mxu1 }
 0x10a   : > { %v1738_v32 = vld [vmem:[#allocation9 + $0xe0] sm:$0xf]  ;;  %v2060_v33 = vld [vmem:[#allocation9 + $0xec] sm:$0xf0]  ;;  %v2058_v37 = vld [vmem:[#allocation9 + $0xe4] sm:$0xf] }
 0x10b   : > { %v1866_v34 = vld [vmem:[#allocation9 + $0x1e0] sm:$0xf]  ;;  %v1739_v35 = vor.u32 %v2060_v33, %v1738_v32  ;;  %v2092_v36 = vld [vmem:[#allocation9 + $0x1ec] sm:$0xf0]  ;;  %v1740_v38 = vld [vmem:[#allocation9 + $0xf0] sm:$0xf0] }
 0x10c   : > { %v1867_v39 = vor.u32 %v2092_v36, %v1866_v34  ;;  %v1743_v40 = vor.u32 %v2058_v37, %v1740_v38  ;;  %v2090_v41 = vld [vmem:[#allocation9 + $0x1e4] sm:$0xf]  ;;  %v1868_v42 = vld [vmem:[#allocation9 + $0x1f0] sm:$0xf0]  ;;  %v1722_v43 = vld [vmem:[#allocation9 + $0xc0] sm:$0xf] }
 0x10d   : > { %993 = vmatpush.bf16.msra.mxu0 %v1739_v35  ;;  %v1871_v44 = vor.u32 %v2090_v41, %v1868_v42  ;;  %v2056_v45 = vld [vmem:[#allocation9 + $0xcc] sm:$0xf0]  ;;  %v1850_v46 = vld [vmem:[#allocation9 + $0x1c0] sm:$0xf]  ;;  %v2054_v50 = vld [vmem:[#allocation9 + $0xc4] sm:$0xf] }
 0x10e   : > { %v2088_v47 = vld [vmem:[#allocation9 + $0x1cc] sm:$0xf0]  ;;  %1006 = vmatpush.bf16.msra.mxu1 %v1867_v39  ;;  %1019 = vmatpush.bf16.msra.mxu2 %v1743_v40  ;;  %v1723_v48 = vor.u32 %v2056_v45, %v1722_v43  ;;  %v1724_v51 = vld [vmem:[#allocation9 + $0xd0] sm:$0xf0]  ;;  %v2086_v52 = vld [vmem:[#allocation9 + $0x1c4] sm:$0xf] }
 0x10f   : > { %v1851_v49 = vor.u32 %v2088_v47, %v1850_v46  ;;  %1032 = vmatpush.bf16.msra.mxu3 %v1871_v44  ;;  %v1727_v53 = vor.u32 %v2054_v50, %v1724_v51  ;;  %v1852_v54 = vld [vmem:[#allocation9 + $0x1d0] sm:$0xf0]  ;;  %v1706_v55 = vld [vmem:[#allocation9 + $0xa0] sm:$0xf]  ;;  %v2052_v56 = vld [vmem:[#allocation9 + $0xac] sm:$0xf0] }
 0x110   : > { %v1855_v57 = vor.u32 %v2086_v52, %v1852_v54  ;;  %v1834_v58 = vld [vmem:[#allocation9 + $0x1a0] sm:$0xf]  ;;  %v2084_v59 = vld [vmem:[#allocation9 + $0x1ac] sm:$0xf0]  ;;  %v2050_v60 = vld [vmem:[#allocation9 + $0xa4] sm:$0xf]  ;;  %v1707_v61 = vor.u32 %v2052_v56, %v1706_v55 }
 0x111   : > { %994 = vmatpush.bf16.msra.mxu0 %v1723_v48  ;;  %v1708_v62 = vld [vmem:[#allocation9 + $0xb0] sm:$0xf0]  ;;  %v2082_v63 = vld [vmem:[#allocation9 + $0x1a4] sm:$0xf]  ;;  %v1835_v1 = vor.u32 %v2084_v59, %v1834_v58  ;;  %v1690_v3 = vld [vmem:[#allocation9 + $0x80] sm:$0xf] }
 0x112   : > { %v1836_v0 = vld [vmem:[#allocation9 + $0x1b0] sm:$0xf0]  ;;  %1007 = vmatpush.bf16.msra.mxu1 %v1851_v49  ;;  %1020 = vmatpush.bf16.msra.mxu2 %v1727_v53  ;;  %v1711_v2 = vor.u32 %v2050_v60, %v1708_v62  ;;  %v2048_v4 = vld [vmem:[#allocation9 + $0x8c] sm:$0xf0]  ;;  %v1818_v5 = vld [vmem:[#allocation9 + $0x180] sm:$0xf] }
 0x113   : > { %1033 = vmatpush.bf16.msra.mxu3 %v1855_v57  ;;  %v1839_v6 = vor.u32 %v2082_v63, %v1836_v0  ;;  %v2080_v7 = vld [vmem:[#allocation9 + $0x18c] sm:$0xf0]  ;;  %v2046_v8 = vld [vmem:[#allocation9 + $0x84] sm:$0xf]  ;;  %v1692_v9 = vld [vmem:[#allocation9 + $0x90] sm:$0xf0]  ;;  %v1691_v12 = vor.u32 %v2048_v4, %v1690_v3 }
 0x114   : > { %v2078_v10 = vld [vmem:[#allocation9 + $0x184] sm:$0xf]  ;;  %v1820_v11 = vld [vmem:[#allocation9 + $0x190] sm:$0xf0]  ;;  %v1819_v13 = vor.u32 %v2080_v7, %v1818_v5  ;;  %v1695_v14 = vor.u32 %v2046_v8, %v1692_v9  ;;  %v1674_v15 = vld [vmem:[#allocation9 + $0x60] sm:$0xf] }
 0x115   : > { %995 = vmatpush.bf16.msra.mxu0 %v1707_v61  ;;  %v2044_v16 = vld [vmem:[#allocation9 + $0x6c] sm:$0xf0]  ;;  %v1802_v17 = vld [vmem:[#allocation9 + $0x160] sm:$0xf]  ;;  %v1823_v18 = vor.u32 %v2078_v10, %v1820_v11  ;;  %v2042_v20 = vld [vmem:[#allocation9 + $0x64] sm:$0xf] }
 0x116   : > { %1008 = vmatpush.bf16.msra.mxu1 %v1835_v1  ;;  %1021 = vmatpush.bf16.msra.mxu2 %v1711_v2  ;;  %v2076_v19 = vld [vmem:[#allocation9 + $0x16c] sm:$0xf0]  ;;  %v1676_v21 = vld [vmem:[#allocation9 + $0x70] sm:$0xf0]  ;;  %v2074_v22 = vld [vmem:[#allocation9 + $0x164] sm:$0xf]  ;;  %v1675_v24 = vor.u32 %v2044_v16, %v1674_v15 }
 0x117   : > { %1034 = vmatpush.bf16.msra.mxu3 %v1839_v6  ;;  %v1804_v23 = vld [vmem:[#allocation9 + $0x170] sm:$0xf0]  ;;  %v1803_v25 = vor.u32 %v2076_v19, %v1802_v17  ;;  %v1679_v26 = vor.u32 %v2042_v20, %v1676_v21  ;;  %v1658_v27 = vld [vmem:[#allocation9 + $0x40] sm:$0xf]  ;;  %v2040_v28 = vld [vmem:[#allocation9 + $0x4c] sm:$0xf0] }
 0x118   : > { %v1786_v29 = vld [vmem:[#allocation9 + $0x140] sm:$0xf]  ;;  %v1807_v30 = vor.u32 %v2074_v22, %v1804_v23  ;;  %v2072_v31 = vld [vmem:[#allocation9 + $0x14c] sm:$0xf0]  ;;  %v2038_v32 = vld [vmem:[#allocation9 + $0x44] sm:$0xf]  ;;  %v1659_v36 = vor.u32 %v2040_v28, %v1658_v27 }
 0x119   : > { %996 = vmatpush.bf16.msra.mxu0 %v1691_v12  ;;  %v1660_v33 = vld [vmem:[#allocation9 + $0x50] sm:$0xf0]  ;;  %v2070_v34 = vld [vmem:[#allocation9 + $0x144] sm:$0xf]  ;;  %v1787_v37 = vor.u32 %v2072_v31, %v1786_v29  ;;  %v1642_v39 = vld [vmem:[#allocation9 + $0x20] sm:$0xf] }
 0x11a   : > { %1009 = vmatpush.bf16.msra.mxu1 %v1819_v13  ;;  %1022 = vmatpush.bf16.msra.mxu2 %v1695_v14  ;;  %v1788_v35 = vld [vmem:[#allocation9 + $0x150] sm:$0xf0]  ;;  %v1663_v38 = vor.u32 %v2038_v32, %v1660_v33  ;;  %v2036_v40 = vld [vmem:[#allocation9 + $0x2c] sm:$0xf0]  ;;  %v1770_v41 = vld [vmem:[#allocation9 + $0x120] sm:$0xf] }
 0x11b   : > { %1035 = vmatpush.bf16.msra.mxu3 %v1823_v18  ;;  %v1791_v42 = vor.u32 %v2070_v34, %v1788_v35  ;;  %v2068_v43 = vld [vmem:[#allocation9 + $0x12c] sm:$0xf0]  ;;  %v2034_v44 = vld [vmem:[#allocation9 + $0x24] sm:$0xf]  ;;  %v1644_v45 = vld [vmem:[#allocation9 + $0x30] sm:$0xf0]  ;;  %v1643_v49 = vor.u32 %v2036_v40, %v1642_v39 }
 0x11c   : > { %v2066_v46 = vld [vmem:[#allocation9 + $0x124] sm:$0xf]  ;;  %v1772_v47 = vld [vmem:[#allocation9 + $0x130] sm:$0xf0]  ;;  %v1626_v48 = vld [vmem:[#allocation9] sm:$0xf]  ;;  %v1771_v53 = vor.u32 %v2068_v43, %v1770_v41  ;;  %v1647_v54 = vor.u32 %v2034_v44, %v1644_v45 }
 0x11d   : > { %997 = vmatpush.bf16.msra.mxu0 %v1675_v24  ;;  %v2032_v50 = vld [vmem:[#allocation9 + $0xc] sm:$0xf0]  ;;  %v1754_v51 = vld [vmem:[#allocation9 + $0x100] sm:$0xf]  ;;  %v2030_v55 = vld [vmem:[#allocation9 + $0x4] sm:$0xf]  ;;  %v1775_v58 = vor.u32 %v2066_v46, %v1772_v47 }
 0x11e   : > { %1010 = vmatpush.bf16.msra.mxu1 %v1803_v25  ;;  %1023 = vmatpush.bf16.msra.mxu2 %v1679_v26  ;;  %v2064_v52 = vld [vmem:[#allocation9 + $0x10c] sm:$0xf0]  ;;  %v1628_v56 = vld [vmem:[#allocation9 + $0x10] sm:$0xf0]  ;;  %v2062_v57 = vld [vmem:[#allocation9 + $0x104] sm:$0xf]  ;;  %v1627_v1 = vor.u32 %v2032_v50, %v1626_v48 }
 0x11f   : > { %1036 = vmatpush.bf16.msra.mxu3 %v1807_v30  ;;  %v1756_v59 = vld [vmem:[#allocation9 + $0x110] sm:$0xf0]  ;;  %v1746_v60 = vld [vmem:[#allocation9 + $0xe8] sm:$0xf]  ;;  %v2061_v61 = vld [vmem:[#allocation9 + $0xf4] sm:$0xf0]  ;;  %v1755_v5 = vor.u32 %v2064_v52, %v1754_v51  ;;  %v1631_v6 = vor.u32 %v2030_v55, %v1628_v56 }
 0x120   : > { %v1874_v62 = vld [vmem:[#allocation9 + $0x1e8] sm:$0xf]  ;;  %v2093_v63 = vld [vmem:[#allocation9 + $0x1f4] sm:$0xf0]  ;;  %v2059_v0 = vld [vmem:[#allocation9 + $0xec] sm:$0xf]  ;;  %v1759_v10 = vor.u32 %v2062_v57, %v1756_v59  ;;  %v1747_v11 = vor.u32 %v2061_v61, %v1746_v60 }
 0x121   : > { %998 = vmatpush.bf16.msra.mxu0 %v1659_v36  ;;  %v1748_v2 = vld [vmem:[#allocation9 + $0xf8] sm:$0xf0]  ;;  %v585_v3 = vld [vmem:[#allocation2] sm:$0xff]  ;;  %v1730_v12 = vld [vmem:[#allocation9 + $0xc8] sm:$0xf]  ;;  %v1875_v14 = vor.u32 %v2093_v63, %v1874_v62 }
 0x122   : > { %1011 = vmatpush.bf16.msra.mxu1 %v1787_v37  ;;  %1024 = vmatpush.bf16.msra.mxu2 %v1663_v38  ;;  %v587_v4 = vld [vmem:[#allocation8] sm:$0x3]  ;;  %v2091_v7 = vld [vmem:[#allocation9 + $0x1ec] sm:$0xf]  ;;  %v586_v13 = vld [vmem:[#allocation2 + $0x8] sm:$0xff]  ;;  %v1751_v15 = vor.u32 %v2059_v0, %v1748_v2 }
 0x123   : > { %1037 = vmatpush.bf16.msra.mxu3 %v1791_v42  ;;  %v1876_v8 = vld [vmem:[#allocation9 + $0x1f8] sm:$0xf0]  ;;  %v589_v9 = vperm.slane %v587_v4, 0  ;;  %v2057_v16 = vld [vmem:[#allocation9 + $0xd4] sm:$0xf0]  ;;  %v590_v19 = vperm.slane %v587_v4, 1 }
 0x124   : > { %v1858_v17 = vld [vmem:[#allocation9 + $0x1c8] sm:$0xf]  ;;  %v1879_v20 = vor.u32 %v2091_v7, %v1876_v8  ;;  %v2089_v21 = vld [vmem:[#allocation9 + $0x1d4] sm:$0xf0]  ;;  %v2055_v22 = vld [vmem:[#allocation9 + $0xcc] sm:$0xf]  ;;  %v1731_v27 = vor.u32 %v2057_v16, %v1730_v12 }
 0x125   : > { %999 = vmatpush.bf16.msra.mxu0 %v1643_v49  ;;  %v593_v18 = vadd.f32 %v589_v9, %v585_v3  ;;  %v1732_v23 = vld [vmem:[#allocation9 + $0xd8] sm:$0xf0]  ;;  %v2087_v24 = vld [vmem:[#allocation9 + $0x1cc] sm:$0xf]  ;;  %v594_v26 = vadd.f32 %v590_v19, %v586_v13  ;;  %v1859_v28 = vor.u32 %v2089_v21, %v1858_v17  ;;  %v1714_v30 = vld [vmem:[#allocation9 + $0xa8] sm:$0xf] }
 0x126   : > { %1012 = vmatpush.bf16.msra.mxu1 %v1771_v53  ;;  %1025 = vmatpush.bf16.msra.mxu2 %v1647_v54  ;;  %v1860_v25 = vld [vmem:[#allocation9 + $0x1d8] sm:$0xf0]  ;;  %v1735_v29 = vor.u32 %v2055_v22, %v1732_v23  ;;  %v2053_v31 = vld [vmem:[#allocation9 + $0xb4] sm:$0xf0]  ;;  %v1842_v32 = vld [vmem:[#allocation9 + $0x1a8] sm:$0xf] }
 0x127   : > { %1038 = vmatpush.bf16.msra.mxu3 %v1775_v58  ;;  %2226 = vtanh.f32 %v593_v18  ;;  %v1863_v33 = vor.u32 %v2087_v24, %v1860_v25  ;;  %v2085_v34 = vld [vmem:[#allocation9 + $0x1b4] sm:$0xf0]  ;;  %v2051_v35 = vld [vmem:[#allocation9 + $0xac] sm:$0xf]  ;;  %v1716_v36 = vld [vmem:[#allocation9 + $0xb8] sm:$0xf0]  ;;  %v1715_v39 = vor.u32 %v2053_v31, %v1714_v30 }
 0x128   : > { %2228 = vtanh.f32 %v594_v26  ;;  %v2083_v37 = vld [vmem:[#allocation9 + $0x1ac] sm:$0xf]  ;;  %v1844_v38 = vld [vmem:[#allocation9 + $0x1b8] sm:$0xf0]  ;;  %v1843_v41 = vor.u32 %v2085_v34, %v1842_v32  ;;  %v1719_v42 = vor.u32 %v2051_v35, %v1716_v36  ;;  %v1698_v43 = vld [vmem:[#allocation9 + $0x88] sm:$0xf] }
 0x129   : > { %1000 = vmatpush.bf16.msra.mxu0 %v1627_v1  ;;  %v2049_v44 = vld [vmem:[#allocation9 + $0x94] sm:$0xf0]  ;;  %v1826_v45 = vld [vmem:[#allocation9 + $0x188] sm:$0xf]  ;;  %v1847_v47 = vor.u32 %v2083_v37, %v1844_v38  ;;  %v2047_v49 = vld [vmem:[#allocation9 + $0x8c] sm:$0xf] }
 0x12a   : > { %1013 = vmatpush.bf16.msra.mxu1 %v1755_v5  ;;  %1026 = vmatpush.bf16.msra.mxu2 %v1631_v6  ;;  %v2081_v48 = vld [vmem:[#allocation9 + $0x194] sm:$0xf0]  ;;  %v1700_v50 = vld [vmem:[#allocation9 + $0x98] sm:$0xf0]  ;;  %v2079_v52 = vld [vmem:[#allocation9 + $0x18c] sm:$0xf]  ;;  %v1699_v55 = vor.u32 %v2049_v44, %v1698_v43 }
 0x12b   : > { %1039 = vmatpush.bf16.msra.mxu3 %v1759_v10  ;;  %v1828_v53 = vld [vmem:[#allocation9 + $0x198] sm:$0xf0]  ;;  %v1827_v56 = vor.u32 %v2081_v48, %v1826_v45  ;;  %v1703_v57 = vor.u32 %v2047_v49, %v1700_v50  ;;  %v1682_v58 = vld [vmem:[#allocation9 + $0x68] sm:$0xf]  ;;  %v2045_v59 = vld [vmem:[#allocation9 + $0x74] sm:$0xf0] }
 0x12c   : > { %v1810_v60 = vld [vmem:[#allocation9 + $0x168] sm:$0xf]  ;;  %v1831_v61 = vor.u32 %v2079_v52, %v1828_v53  ;;  %v2077_v62 = vld [vmem:[#allocation9 + $0x174] sm:$0xf0]  ;;  %v2043_v63 = vld [vmem:[#allocation9 + $0x6c] sm:$0xf]  ;;  %v1683_v3 = vor.u32 %v2045_v59, %v1682_v58 }
 0x12d   : > { %1045 = vmatpush.bf16.msrb.mxu0 %v1747_v11  ;;  %v2227_v40 = vpop.eup %2226  ;;  %v1684_v0 = vld [vmem:[#allocation9 + $0x78] sm:$0xf0]  ;;  %v2075_v1 = vld [vmem:[#allocation9 + $0x16c] sm:$0xf]  ;;  %v1666_v4 = vld [vmem:[#allocation9 + $0x48] sm:$0xf]  ;;  %v1811_v5 = vor.u32 %v2077_v62, %v1810_v60 }
 0x12e   : > { %1058 = vmatpush.bf16.msrb.mxu1 %v1875_v14  ;;  %1071 = vmatpush.bf16.msrb.mxu2 %v1751_v15  ;;  %v2739_v46 = vpack.c.bf16 %v2227_v40, %v2227_v40  ;;  %v2229_v51 = vpop.eup %2228  ;;  %v1812_v2 = vld [vmem:[#allocation9 + $0x178] sm:$0xf0]  ;;  %v1687_v6 = vor.u32 %v2043_v63, %v1684_v0  ;;  %v2041_v7 = vld [vmem:[#allocation9 + $0x54] sm:$0xf0]  ;;  %v1794_v8 = vld [vmem:[#allocation9 + $0x148] sm:$0xf] }
 0x12f   : > { %1084 = vmatpush.bf16.msrb.mxu3 %v1879_v20  ;;  %v2742_v54 = vpack.c.bf16 %v2229_v51, %v2229_v51  ;;  %v2073_v9 = vld [vmem:[#allocation9 + $0x154] sm:$0xf0]  ;;  %v1815_v10 = vor.u32 %v2075_v1, %v1812_v2  ;;  %v2039_v11 = vld [vmem:[#allocation9 + $0x4c] sm:$0xf]  ;;  %v1668_v12 = vld [vmem:[#allocation9 + $0x58] sm:$0xf0]  ;;  %v1667_v15 = vor.u32 %v2041_v7, %v1666_v4 }
 0x130   : > { %1027 = vmatmul.bf16.vlgmr.msra.gmra.mxu2 %v2739_v46  ;;  %1001 = vmatmul.bf16.vlgmr.msra.gmra.mxu0 %v2739_v46  ;;  %v2071_v13 = vld [vmem:[#allocation9 + $0x14c] sm:$0xf]  ;;  %v1796_v14 = vld [vmem:[#allocation9 + $0x158] sm:$0xf0]  ;;  %v1795_v16 = vor.u32 %v2073_v9, %v1794_v8  ;;  %v1671_v17 = vor.u32 %v2039_v11, %v1668_v12  ;;  %v1650_v18 = vld [vmem:[#allocation9 + $0x28] sm:$0xf] }
 0x131   : > { %1046 = vmatpush.bf16.msrb.mxu0 %v1731_v27  ;;  %1040 = vmatmul.bf16.vlgmr.msra.gmra.mxu3 %v2742_v54  ;;  %v2037_v19 = vld [vmem:[#allocation9 + $0x34] sm:$0xf0]  ;;  %v1778_v20 = vld [vmem:[#allocation9 + $0x128] sm:$0xf]  ;;  %v1799_v21 = vor.u32 %v2071_v13, %v1796_v14  ;;  %v2035_v23 = vld [vmem:[#allocation9 + $0x2c] sm:$0xf] }
 0x132   : > { %1059 = vmatpush.bf16.msrb.mxu1 %v1859_v28  ;;  %1072 = vmatpush.bf16.msrb.mxu2 %v1735_v29  ;;  %v2069_v22 = vld [vmem:[#allocation9 + $0x134] sm:$0xf0]  ;;  %v1652_v24 = vld [vmem:[#allocation9 + $0x38] sm:$0xf0]  ;;  %v2067_v25 = vld [vmem:[#allocation9 + $0x12c] sm:$0xf]  ;;  %v1651_v27 = vor.u32 %v2037_v19, %v1650_v18 }
 0x133   : > { %1085 = vmatpush.bf16.msrb.mxu3 %v1863_v33  ;;  %1014 = vmatmul.bf16.vlgmr.msra.gmra.mxu1 %v2742_v54  ;;  %v1780_v26 = vld [vmem:[#allocation9 + $0x138] sm:$0xf0]  ;;  %v1779_v28 = vor.u32 %v2069_v22, %v1778_v20  ;;  %v1655_v29 = vor.u32 %v2035_v23, %v1652_v24  ;;  %v1634_v30 = vld [vmem:[#allocation9 + $0x8] sm:$0xf]  ;;  %v2033_v31 = vld [vmem:[#allocation9 + $0x14] sm:$0xf0] }
 0x134   : > { %v1762_v32 = vld [vmem:[#allocation9 + $0x108] sm:$0xf]  ;;  %v1783_v33 = vor.u32 %v2067_v25, %v1780_v26  ;;  %v2065_v34 = vld [vmem:[#allocation9 + $0x114] sm:$0xf0]  ;;  %v2031_v35 = vld [vmem:[#allocation9 + $0xc] sm:$0xf] }
 0x135   : > { %1047 = vmatpush.bf16.msrb.mxu0 %v1715_v39  ;;  %v1636_v36 = vld [vmem:[#allocation9 + $0x18] sm:$0xf0]  ;;  %v2063_v37 = vld [vmem:[#allocation9 + $0x10c] sm:$0xf]  ;;  %v1635_v39 = vor.u32 %v2033_v31, %v1634_v30  ;;  %v1763_v40 = vor.u32 %v2065_v34, %v1762_v32  ;;  %v2108_v48 = vld [vmem:[#allocation12 + $0x70] sm:$0xff] }
 0x136   : > { %1060 = vmatpush.bf16.msrb.mxu1 %v1843_v41  ;;  %1073 = vmatpush.bf16.msrb.mxu2 %v1719_v42  ;;  %v1764_v38 = vld [vmem:[#allocation9 + $0x118] sm:$0xf0]  ;;  %v1639_v41 = vor.u32 %v2031_v35, %v1636_v36  ;;  %v2099_v49 = vld [vmem:[#allocation12 + $0x28] sm:$0xff]  ;;  %v2098_v51 = vld [vmem:[#allocation12 + $0x20] sm:$0xff] }
 0x137   : > { %1086 = vmatpush.bf16.msrb.mxu3 %v1847_v47  ;;  %v1767_v42 = vor.u32 %v2063_v37, %v1764_v38  ;;  %v2101_v43 = vld [vmem:[#allocation12 + $0x38] sm:$0xff]  ;;  %v2100_v47 = vld [vmem:[#allocation12 + $0x30] sm:$0xff]  ;;  %v2107_v50 = vld [vmem:[#allocation12 + $0x68] sm:$0xff] }
 0x138   : > { %v2109_v44 = vld [vmem:[#allocation12 + $0x78] sm:$0xff]  ;;  %v2106_v52 = vld [vmem:[#allocation12 + $0x60] sm:$0xff]  ;;  %v2103_v58 = vld [vmem:[#allocation12 + $0x48] sm:$0xff] }
 0x139   : > { %1048 = vmatpush.bf16.msrb.mxu0 %v1699_v55  ;;  %v2117_v45 = vld [vmem:[#allocation12 + $0xb8] sm:$0xff]  ;;  %v2115_v60 = vld [vmem:[#allocation12 + $0xa8] sm:$0xff]  ;;  %v2102_v62 = vld [vmem:[#allocation12 + $0x40] sm:$0xff] }
 0x13a   : > { %1061 = vmatpush.bf16.msrb.mxu1 %v1827_v56  ;;  %1074 = vmatpush.bf16.msrb.mxu2 %v1703_v57  ;;  %v2097_v53 = vld [vmem:[#allocation12 + $0x18] sm:$0xff]  ;;  %v2096_v56 = vld [vmem:[#allocation12 + $0x10] sm:$0xff]  ;;  %v2114_v0 = vld [vmem:[#allocation12 + $0xa0] sm:$0xff] }
 0x13b   : > { %1087 = vmatpush.bf16.msrb.mxu3 %v1831_v61  ;;  %v2105_v55 = vld [vmem:[#allocation12 + $0x58] sm:$0xff]  ;;  %v2104_v57 = vld [vmem:[#allocation12 + $0x50] sm:$0xff]  ;;  %v2094_v61 = vld [vmem:[#allocation12] sm:$0xff] }
 0x13c   : > { %v2125_v59 = vld [vmem:[#allocation12 + $0xf8] sm:$0xff]  ;;  %v2124_v63 = vld [vmem:[#allocation12 + $0xf0] sm:$0xff]  ;;  %v2123_v1 = vld [vmem:[#allocation12 + $0xe8] sm:$0xff] }
 0x13d   : > { %1049 = vmatpush.bf16.msrb.mxu0 %v1683_v3  ;;  %v2113_v2 = vld [vmem:[#allocation12 + $0x98] sm:$0xff]  ;;  %v2122_v3 = vld [vmem:[#allocation12 + $0xe0] sm:$0xff]  ;;  %v2112_v4 = vld [vmem:[#allocation12 + $0x90] sm:$0xff] }
 0x13e   : > { %1062 = vmatpush.bf16.msrb.mxu1 %v1811_v5  ;;  %1075 = vmatpush.bf16.msrb.mxu2 %v1687_v6  ;;  %v2121_v5 = vld [vmem:[#allocation12 + $0xd8] sm:$0xff]  ;;  %v2111_v6 = vld [vmem:[#allocation12 + $0x88] sm:$0xff]  ;;  %v2120_v7 = vld [vmem:[#allocation12 + $0xd0] sm:$0xff] }
 0x13f   : > { %1088 = vmatpush.bf16.msrb.mxu3 %v1815_v10  ;;  %v663_v8 = vld [vmem:[#allocation11] sm:$0xf]  ;;  %v2110_v9 = vld [vmem:[#allocation12 + $0x80] sm:$0xff]  ;;  %v2119_v11 = vld [vmem:[#allocation12 + $0xc8] sm:$0xff] }
 0x140   : > { %v665_v10 = vperm.slane %v663_v8, 0  ;;  %v666_v14 = vperm.slane %v663_v8, 1  ;;  %v667_v30 = vperm.slane %v663_v8, 2  ;;  %v668_v35 = vperm.slane %v663_v8, 3 }
 0x141   : > { %1050 = vmatpush.bf16.msrb.mxu0 %v1667_v15 }
 0x142   : > { %1063 = vmatpush.bf16.msrb.mxu1 %v1795_v16  ;;  %1076 = vmatpush.bf16.msrb.mxu2 %v1671_v17  ;;  %v2118_v16 = vld [vmem:[#allocation12 + $0xc0] sm:$0xff] }
 0x143   : > { %1089 = vmatpush.bf16.msrb.mxu3 %v1799_v21 }
 0x145   : > { %1051 = vmatpush.bf16.msrb.mxu0 %v1651_v27 }
 0x146   : > { %1064 = vmatpush.bf16.msrb.mxu1 %v1779_v28  ;;  %1077 = vmatpush.bf16.msrb.mxu2 %v1655_v29 }
 0x147   : > { %1090 = vmatpush.bf16.msrb.mxu3 %v1783_v33 }
 0x149   : > { %1052 = vmatpush.bf16.msrb.mxu0 %v1635_v39 }
 0x14a   : > { %1065 = vmatpush.bf16.msrb.mxu1 %v1763_v40  ;;  %1078 = vmatpush.bf16.msrb.mxu2 %v1639_v41 }
 0x14b   : > { %1091 = vmatpush.bf16.msrb.mxu3 %v1767_v42 }
 0x14c   : > { %1053 = vmatmul.bf16.vlgmr.msrb.gmra.mxu0 %v2739_v46 }
 0x14d   : > { %1365 = vmatpush.bf16.msra.mxu0 %v2101_v43  ;;  %1066 = vmatmul.bf16.vlgmr.msrb.gmra.mxu1 %v2742_v54 }
 0x14e   : > { %1378 = vmatpush.bf16.msra.mxu1 %v2109_v44  ;;  %1079 = vmatmul.bf16.vlgmr.msrb.gmra.mxu2 %v2739_v46  ;;  %v2116_v46 = vld [vmem:[#allocation12 + $0xb0] sm:$0xff] }
 0x14f   : > { %1092 = vmatmul.bf16.vlgmr.msrb.gmra.mxu3 %v2742_v54  ;;  %1391 = vmatpush.bf16.msra.mxu2 %v2117_v45  ;;  %v2095_v54 = vld [vmem:[#allocation12 + $0x8] sm:$0xff] }
 0x150   : > { %1404 = vmatpush.bf16.msra.mxu3 %v2125_v59 }
 0x151   : > { %1366 = vmatpush.bf16.msra.mxu0 %v2100_v47 }
 0x152   : > { %1379 = vmatpush.bf16.msra.mxu1 %v2108_v48 }
 0x153   : > { %1392 = vmatpush.bf16.msra.mxu2 %v2116_v46 }
 0x154   : > { %1405 = vmatpush.bf16.msra.mxu3 %v2124_v63 }
 0x155   : > { %1367 = vmatpush.bf16.msra.mxu0 %v2099_v49 }
 0x156   : > { %1380 = vmatpush.bf16.msra.mxu1 %v2107_v50 }
 0x157   : > { %1393 = vmatpush.bf16.msra.mxu2 %v2115_v60 }
 0x158   : > { %1406 = vmatpush.bf16.msra.mxu3 %v2123_v1 }
 0x159   : > { %1368 = vmatpush.bf16.msra.mxu0 %v2098_v51 }
 0x15a   : > { %1381 = vmatpush.bf16.msra.mxu1 %v2106_v52 }
 0x15b   : > { %1394 = vmatpush.bf16.msra.mxu2 %v2114_v0 }
 0x15c   : > { %1407 = vmatpush.bf16.msra.mxu3 %v2122_v3 }
 0x15d   : > { %1369 = vmatpush.bf16.msra.mxu0 %v2097_v53  ;;  %v2225_v53 = vld [vmem:[%s2777_s6] ss:$0 sm:$0xff] }
 0x15e   : > { %1382 = vmatpush.bf16.msra.mxu1 %v2105_v55 }
 0x15f   : > { %1395 = vmatpush.bf16.msra.mxu2 %v2113_v2 }
 0x160   : > { %1408 = vmatpush.bf16.msra.mxu3 %v2121_v5 }
 0x161   : > { %1370 = vmatpush.bf16.msra.mxu0 %v2096_v56 }
 0x162   : > { %1383 = vmatpush.bf16.msra.mxu1 %v2104_v57 }
 0x163   : > { %1396 = vmatpush.bf16.msra.mxu2 %v2112_v4 }
 0x164   : > { %1409 = vmatpush.bf16.msra.mxu3 %v2120_v7 }
 0x165   : > { %1371 = vmatpush.bf16.msra.mxu0 %v2095_v54 }
 0x166   : > { %1384 = vmatpush.bf16.msra.mxu1 %v2103_v58 }
 0x167   : > { %1397 = vmatpush.bf16.msra.mxu2 %v2111_v6 }
 0x168   : > { %1410 = vmatpush.bf16.msra.mxu3 %v2119_v11 }
 0x169   : > { %1372 = vmatpush.bf16.msra.mxu0 %v2094_v61 }
 0x16a   : > { %1385 = vmatpush.bf16.msra.mxu1 %v2102_v62 }
 0x16b   : > { %1398 = vmatpush.bf16.msra.mxu2 %v2110_v9 }
 0x16c   : > { %1411 = vmatpush.bf16.msra.mxu3 %v2118_v16 }
 0x1ad   : > { %v1002_v12 = vpop.f32.mrf.mxu0 }
 0x1ae   : > { %v1003_v13 = vadd.f32 %v1002_v12, %v665_v10 }
 0x1b0   : > { %v1015_v15 = vpop.f32.mrf.mxu1 }
 0x1b1   : > { %v1016_v17 = vadd.f32 %v1015_v15, %v1003_v13 }
 0x1b3   : > { %v1028_v18 = vpop.f32.mrf.mxu2  ;;  %v1097_v20 = vmax.f32 %v1016_v17, 0.0 }
 0x1b4   : > { %v1029_v19 = vadd.f32 %v1028_v18, %v666_v14  ;;  %v1041_v22 = vpop.f32.mrf.mxu3 }
 0x1b5   : > { %v1101_v21 = vpack.c.bf16 %v1097_v20, %v1097_v20  ;;  %v1004_v24 = vpop.f32.mrf.mxu0 }
 0x1b6   : > { %v1042_v23 = vadd.f32 %v1041_v22, %v1029_v19 }
 0x1b7   : > { %1373 = vmatmul.bf16.vlgmr.msra.gmra.mxu0 %v1101_v21 }
 0x1b8   : > { %v1017_v25 = vpop.f32.mrf.mxu1  ;;  %v1098_v26 = vmax.f32 %v1042_v23, 0.0 }
 0x1ba   : > { %v1102_v27 = vpack.c.bf16 %v1098_v26, %v1098_v26 }
 0x1bb   : > { %v1030_v28 = vpop.f32.mrf.mxu2 }
 0x1bc   : > { %1386 = vmatmul.bf16.vlgmr.msra.gmra.mxu1 %v1102_v27  ;;  %v1043_v29 = vpop.f32.mrf.mxu3 }
 0x1c9   : > { %v1054_v31 = vpop.f32.mrf.mxu0 }
 0x1ca   : > { %v1055_v32 = vadd.f32 %v1054_v31, %v667_v30  ;;  %v1067_v33 = vpop.f32.mrf.mxu1 }
 0x1cc   : > { %v1068_v34 = vadd.f32 %v1067_v33, %v1055_v32 }
 0x1ce   : > { %v1099_v36 = vmax.f32 %v1068_v34, 0.0 }
 0x1d0   : > { %v1103_v37 = vpack.c.bf16 %v1099_v36, %v1099_v36 }
 0x1d1   : > { %v1080_v38 = vpop.f32.mrf.mxu2  ;;  %v1056_v41 = vpop.f32.mrf.mxu0 }
 0x1d2   : > { %v1081_v39 = vadd.f32 %v1080_v38, %v668_v35  ;;  %v1093_v40 = vpop.f32.mrf.mxu3  ;;  %v1069_v42 = vpop.f32.mrf.mxu1  ;;  %1399 = vmatmul.bf16.vlgmr.msra.gmra.mxu2 %v1103_v37 }
 0x1d4   : > { %v1094_v43 = vadd.f32 %v1093_v40, %v1081_v39 }
 0x1d6   : > { %v1100_v44 = vmax.f32 %v1094_v43, 0.0 }
 0x1d8   : > { %v1104_v45 = vpack.c.bf16 %v1100_v44, %v1100_v44 }
 0x1d9   : > { %v1082_v47 = vpop.f32.mrf.mxu2 }
 0x1da   : > { %v1095_v48 = vpop.f32.mrf.mxu3  ;;  %1412 = vmatmul.bf16.vlgmr.msra.gmra.mxu3 %v1104_v45 }
 0x234   : > { %v1374_v49 = vpop.f32.mrf.mxu0 }
 0x235   : > { %v1375_v55 = vadd.f32 %v2225_v53, %v1374_v49 }
 0x239   : > { %v1387_v50 = vpop.f32.mrf.mxu1 }
 0x23a   : > { %v1388_v57 = vadd.f32 %v1387_v50, %v1375_v55 }
 0x23c   : > { %v1376_v51 = vpop.f32.mrf.mxu0 }
 0x241   : > { %v1389_v52 = vpop.f32.mrf.mxu1 }
 0x255   : > { %v1400_v56 = vpop.f32.mrf.mxu2 }
 0x256   : > { %v1401_v46 = vadd.f32 %v1400_v56, %v1388_v57 }
 0x25d   : > { %v1413_v54 = vpop.f32.mrf.mxu3  ;;  %v1402_v59 = vpop.f32.mrf.mxu2 }
 0x25e   : > { %v1414_v58 = vadd.f32 %v1413_v54, %v1401_v46 }
 0x260   : > { %1417 = vst [vmem:[#allocation14] sm:$0xff] %v1414_v58 }
 0x265   : > { %v1415_v60 = vpop.f32.mrf.mxu3 }
 0x266 PF: > { %p2179_p4 = scmp.eq.s32.totalorder %s2565_s28, 1  ;;  %s2505_s22 = smov [#allocation14]  }
 0x267   : > { %s1424_s23 = sshll.u32 %s2505_s22, 4  ;;  %s1426_s18 = sshll.u32 %s2778_s7, 4  ;;  %s1425_s23 = int_to_ptr.vmem [resolvable:$true] %s1424_s23  ;;  %s1427_s18 = int_to_ptr.hbm [resolvable:$true] %s1426_s18 }
 0x268   : > { %2147 = dma.vmem_to_hbm [thread:$0]  (%p2179_p4), %s1425_s23, 128, %s1427_s18, [#allocation5]  }
 0x269   : > { %2475 = dma.done.wait (%p2179_p4), [#allocation5], 128  }
 0x26a   : > { %2477 = vsyncadd (%p2179_p4), [#allocation5], 4294967168 }
 0x26b PF: > { %p23_p5 = scmp.ge.s32.totalorder %s2613_s17, 4   ;;  %s2793_s24 = smov %s2484_s25 }
 0x26c   : > { %s2794_s25 = smov %s2488_s26  ;;  %s2795_s26 = smov %s2622_s21 }
 0x26d   : > { %s2796_s27 = smov %s2613_s17  ;;  %25 = sbr.rel (!%p23_p5) target bundleno = 13 (0xd), region = 122 }
 0x272   :  { %1440 = vsyncpa [#allocation4], 1 }
 0x273   :  { %1442 = vsyncpa [#allocation4 + $0x1], 1 }
 0x274   :  { %1443 = vsyncpa [#allocation7], 1 }
 0x275   :  { %1445 = vsyncpa [#allocation7 + $0x1], 1 }
 0x276   :  { %1446 = vsyncpa [#allocation10], 1 }
 0x277   :  { %1447 = vsyncpa [#allocation13], 1 }
 0x278   :  { %1448 = vsyncpa [#allocation5], 1 }
 0x279   :  { %1450 = vsyncpa [#allocation5 + $0x1], 1 }

</bundles_post_ra>
